<compile_context>
chip_gen: v7x
topology: tpu7x:2x2x1
jax: 0.10.0
libtpu: 0.0.40
codegen_flags: <defaults>
</compile_context>

<pallas_src>
import functools

import jax
import jax.numpy as jnp
from jax.experimental import pallas as pl
from jax.experimental.pallas import tpu as pltpu

LANE = 128
SUBLANE = 8
STATE_PACK = 16          # bf16 sublane pack for w1's contraction dim
H1_PAD = 512             # 400 padded to lane multiple
H2_PAD = 384             # 300 padded to lane multiple


def _round_up(x, m):
    return (x + m - 1) // m * m


def _device_kind():
    try:
        return jax.devices()[0].device_kind.lower()
    except Exception:
        return ""


def _is_v5e(kind=None):
    kind = _device_kind() if kind is None else kind
    return ("v5 lite" in kind) or ("v5e" in kind) or ("v5litepod" in kind)


def _is_v7(kind=None):
    kind = _device_kind() if kind is None else kind
    return "v7" in kind


def _choose_batch_tile(batch):
    """Pick (tb, b_pad): a large tile to amortize ~0.35us/grid-step overhead,
    minimal zero-row padding, and >=2 grid steps on v7x (2 TCs) when possible."""
    kind = _device_kind()
    max_tile = 512 if _is_v5e(kind) else 1024
    min_tiles = 2 if _is_v7(kind) else 1
    b = _round_up(batch, SUBLANE)
    cap = min(max_tile, max(SUBLANE, _round_up(-(-b // min_tiles), SUBLANE)))
    if b <= cap:
        return b, b
    best = None
    for tb in range(cap, 0, -SUBLANE):
        bp = _round_up(b, tb)
        key = (bp - b, -tb)            # least padding first, then biggest tile
        if best is None or key < best[0]:
            best = (key, tb, bp)
    return best[1], best[2]


# ---------------------------------------------------------------------------
# Kernel
# ---------------------------------------------------------------------------
def _actor_kernel(max_action, bf16_epilogue,
                  x_ref, w1_ref, b1_ref, w2_ref, b2_ref, w3_ref, b3_ref,
                  o_ref):
    # x tile: [TB, s_pad] f32 (cast to bf16 here, on the VMEM tile);
    # w1/w2/w3/b1/b2 bf16; b3 f32; output dtype = out_dtype (bf16 default).
    x = x_ref[...].astype(jnp.bfloat16)

    # Layer 1: Linear(state -> 512[=400 padded]) + ReLU   (bf16 MXU, f32 acc)
    h1 = jnp.dot(x, w1_ref[...], preferred_element_type=jnp.float32)
    if bf16_epilogue:
        h1 = jnp.maximum(h1.astype(jnp.bfloat16) + b1_ref[...], 0)
    else:
        h1 = jnp.maximum(h1 + b1_ref[...].astype(jnp.float32), 0.0).astype(jnp.bfloat16)

    # Layer 2: Linear(512 -> 384[=300 padded]) + ReLU
    h2 = jnp.dot(h1, w2_ref[...], preferred_element_type=jnp.float32)
    if bf16_epilogue:
        h2 = jnp.maximum(h2.astype(jnp.bfloat16) + b2_ref[...], 0)
    else:
        h2 = jnp.maximum(h2 + b2_ref[...].astype(jnp.float32), 0.0).astype(jnp.bfloat16)

    # Layer 3: Linear(384 -> A_pad) + Tanh, then scale by max_action (f32 EUP/VPU)
    h3 = jnp.dot(h2, w3_ref[...], preferred_element_type=jnp.float32)
    y = jnp.tanh(h3 + b3_ref[...]) * max_action
    o_ref[...] = y.astype(o_ref.dtype)


# ---------------------------------------------------------------------------
# Wrapper
# ---------------------------------------------------------------------------
@functools.partial(
    jax.jit,
    static_argnames=("max_action", "action_dim", "out_dtype", "bf16_epilogue"))
def actor_forward(x, pparams, max_action, action_dim,
                  out_dtype=jnp.bfloat16, bf16_epilogue=None):
    """x: [batch, state_dim] f32. pparams: padded/bf16 params from prepare_actor_params."""
    batch, state_dim = x.shape
    s_pad = pparams["w1"].shape[0]
    a_pad = pparams["w3"].shape[1]

    if bf16_epilogue is None:
        bf16_epilogue = not _is_v5e()   # v5e VPU has no bf16: keep f32 epilogues there

    tb, b_pad = _choose_batch_tile(batch)

    # Only batch-dim (and tiny state-pack) zero padding; no lane padding or
    # dtype cast of x through HBM — bf16 cast happens inside the kernel.
    if (b_pad, s_pad) != (batch, state_dim):
        x = jnp.pad(x, ((0, b_pad - batch), (0, s_pad - state_dim)))

    grid = (b_pad // tb,)
    kernel = functools.partial(_actor_kernel, float(max_action), bool(bf16_epilogue))

    out_p = pl.pallas_call(
        kernel,
        out_shape=jax.ShapeDtypeStruct((b_pad, a_pad), out_dtype),
        grid=grid,
        in_specs=[
            pl.BlockSpec((tb, s_pad), lambda i: (i, 0)),       # x: tiled over batch
            pl.BlockSpec((s_pad, H1_PAD), lambda i: (0, 0)),   # weights/biases: constant
            pl.BlockSpec((1, H1_PAD), lambda i: (0, 0)),       #   index_map -> DMA'd once,
            pl.BlockSpec((H1_PAD, H2_PAD), lambda i: (0, 0)),  #   stay resident in VMEM
            pl.BlockSpec((1, H2_PAD), lambda i: (0, 0)),
            pl.BlockSpec((H2_PAD, a_pad), lambda i: (0, 0)),
            pl.BlockSpec((1, a_pad), lambda i: (0, 0)),
        ],
        out_specs=pl.BlockSpec((tb, a_pad), lambda i: (i, 0)),
        compiler_params=pltpu.CompilerParams(
            dimension_semantics=("parallel",),   # shard batch tiles across TCs (v7x)
        ),
    )(x, pparams["w1"], pparams["b1"], pparams["w2"], pparams["b2"],
      pparams["w3"], pparams["b3"])

    return out_p[:batch, :action_dim]


# ---------------------------------------------------------------------------
# Parameter construction / preparation
# ---------------------------------------------------------------------------
def init_actor_params(key, state_dim, action_dim):
    """Deterministic synthetic parameters (f32). Weights are [in, out] layout."""
    k1, k2, k3, k4, k5, k6 = jax.random.split(key, 6)

    def unif(k, shape, fan_in):
        bound = 1.0 / jnp.sqrt(fan_in)   # matches torch.nn.Linear default init range
        return jax.random.uniform(k, shape, jnp.float32, -bound, bound)

    return {
        "w1": unif(k1, (state_dim, 400), state_dim),
        "b1": unif(k2, (1, 400), state_dim),
        "w2": unif(k3, (400, 300), 400),
        "b2": unif(k4, (1, 300), 400),
        "w3": unif(k5, (300, action_dim), 300),
        "b3": unif(k6, (1, action_dim), 300),
    }


def prepare_actor_params(params):
    """Zero-pad dims (state->16-multiple, hidden/out->lane multiples); cast
    weights and hidden biases to bf16; keep the final bias f32."""
    state_dim = params["w1"].shape[0]
    action_dim = params["w3"].shape[1]
    s_pad = _round_up(state_dim, STATE_PACK)
    a_pad = _round_up(action_dim, LANE)

    def pad2(a, shape):
        out = jnp.zeros(shape, a.dtype)
        return out.at[:a.shape[0], :a.shape[1]].set(a)

    return {
        "w1": pad2(params["w1"], (s_pad, H1_PAD)).astype(jnp.bfloat16),
        "b1": pad2(params["b1"], (1, H1_PAD)).astype(jnp.bfloat16),
        "w2": pad2(params["w2"], (H1_PAD, H2_PAD)).astype(jnp.bfloat16),
        "b2": pad2(params["b2"], (1, H2_PAD)).astype(jnp.bfloat16),
        "w3": pad2(params["w3"], (H2_PAD, a_pad)).astype(jnp.bfloat16),
        "b3": pad2(params["b3"], (1, a_pad)),   # f32: final tanh epilogue stays f32
    }


# ---------------------------------------------------------------------------
# References
# ---------------------------------------------------------------------------
def actor_ref_prepared(x, pparams, max_action, action_dim, bf16_epilogue):
    """Pure-JAX reference mirroring the kernel math on the same padded params."""
    state_dim = x.shape[1]
    s_pad = pparams["w1"].shape[0]
    xb = jnp.pad(x, ((0, 0), (0, s_pad - state_dim))).astype(jnp.bfloat16)
    h1 = jnp.dot(xb, pparams["w1"], preferred_element_type=jnp.float32)
    if bf16_epilogue:
        h1 = jnp.maximum(h1.astype(jnp.bfloat16) + pparams["b1"], 0)
    else:
        h1 = jnp.maximum(h1 + pparams["b1"].astype(jnp.float32), 0.0).astype(jnp.bfloat16)
    h2 = jnp.dot(h1, pparams["w2"], preferred_element_type=jnp.float32)
    if bf16_epilogue:
        h2 = jnp.maximum(h2.astype(jnp.bfloat16) + pparams["b2"], 0)
    else:
        h2 = jnp.maximum(h2 + pparams["b2"].astype(jnp.float32), 0.0).astype(jnp.bfloat16)
    h3 = jnp.dot(h2, pparams["w3"], preferred_element_type=jnp.float32)
    y = jnp.tanh(h3 + pparams["b3"]) * max_action
    return y[:, :action_dim]


def actor_ref_f32(x, params, max_action):
    """Full-precision reference (loose semantic check vs bf16 weights)."""
    h1 = jnp.maximum(x @ params["w1"] + params["b1"], 0.0)
    h2 = jnp.maximum(h1 @ params["w2"] + params["b2"], 0.0)
    return jnp.tanh(h2 @ params["w3"] + params["b3"]) * max_action


if __name__ == "__main__":
    state_dim = 16
    action_dim = 4
    max_action = 2.0
    batch = 2

    key = jax.random.PRNGKey(0)
    kx, kp = jax.random.split(key)
    x = jax.random.normal(kx, (batch, state_dim), jnp.float32)
    raw_params = init_actor_params(kp, state_dim, action_dim)
    params = prepare_actor_params(raw_params)   # padded + bf16, done once offline

    epi = not _is_v5e()   # same auto choice the wrapper makes

    # f32-output run: tight check against a JAX reference using identical padded params.
    out_f32 = actor_forward(x, params, max_action, action_dim,
                            out_dtype=jnp.float32, bf16_epilogue=epi)
    out_f32 = jax.block_until_ready(out_f32)
    assert out_f32.shape == (batch, action_dim)
    expected = actor_ref_prepared(x, params, max_action, action_dim, epi)
    assert jnp.allclose(out_f32, expected, atol=1e-4, rtol=1e-4), "mismatch vs prepared-params reference"

    # Default (bf16-output) run: only output rounding vs the f32-output run.
    out_bf16 = actor_forward(x, params, max_action, action_dim)
    out_bf16 = jax.block_until_ready(out_bf16)
    assert out_bf16.shape == (batch, action_dim)
    assert jnp.allclose(out_bf16.astype(jnp.float32), out_f32, atol=2e-2), "bf16 output mismatch"

    # Loose semantic check against the original f32 module (bf16 weight rounding only).
    expected_f32 = actor_ref_f32(x, raw_params, max_action)
    assert jnp.allclose(out_f32, expected_f32, atol=1e-1, rtol=1e-1), "mismatch vs f32 reference"

    print("KERNEL_OK")
</pallas_src>

<mosaic_0001>
module attributes {stable_mosaic.version = 11 : i64} {
  func.func @_actor_kernel(%arg0: i32, %arg1: memref<8x16xf32, #tpu.memory_space<vmem>>, %arg2: memref<16x512xbf16, #tpu.memory_space<vmem>>, %arg3: memref<1x512xbf16, #tpu.memory_space<vmem>>, %arg4: memref<512x384xbf16, #tpu.memory_space<vmem>>, %arg5: memref<1x384xbf16, #tpu.memory_space<vmem>>, %arg6: memref<384x128xbf16, #tpu.memory_space<vmem>>, %arg7: memref<1x128xf32, #tpu.memory_space<vmem>>, %arg8: memref<8x128xf32, #tpu.memory_space<vmem>>) attributes {dimension_semantics = [#tpu.dimension_semantics<parallel>], iteration_bounds = array<i64: 1>, scalar_prefetch = 0 : i64, scratch_operands = 0 : i64, tpu.core_type = #tpu.core_type<tc>, window_params = [{transform_indices = @transform_0, window_bounds = array<i64: 8, 16>}, {pipeline_mode = #tpu.pipeline_mode<synchronous>, transform_indices = @transform_1, window_bounds = array<i64: 16, 512>}, {pipeline_mode = #tpu.pipeline_mode<synchronous>, transform_indices = @transform_2, window_bounds = array<i64: 1, 512>}, {pipeline_mode = #tpu.pipeline_mode<synchronous>, transform_indices = @transform_3, window_bounds = array<i64: 512, 384>}, {pipeline_mode = #tpu.pipeline_mode<synchronous>, transform_indices = @transform_4, window_bounds = array<i64: 1, 384>}, {pipeline_mode = #tpu.pipeline_mode<synchronous>, transform_indices = @transform_5, window_bounds = array<i64: 384, 128>}, {pipeline_mode = #tpu.pipeline_mode<synchronous>, transform_indices = @transform_6, window_bounds = array<i64: 1, 128>}, {transform_indices = @transform_7, window_bounds = array<i64: 8, 128>}]} {
    %c0 = arith.constant 0 : index
    %c0_0 = arith.constant 0 : index
    %0 = vector.load %arg1[%c0, %c0_0] : memref<8x16xf32, #tpu.memory_space<vmem>>, vector<8x16xf32>
    %1 = arith.truncf %0 : vector<8x16xf32> to vector<8x16xbf16>
    %c0_1 = arith.constant 0 : index
    %c0_2 = arith.constant 0 : index
    %2 = vector.load %arg2[%c0_1, %c0_2] : memref<16x512xbf16, #tpu.memory_space<vmem>>, vector<16x512xbf16>
    %cst = arith.constant dense<0.000000e+00> : vector<8x512xf32>
    %3 = tpu.matmul %1, %2, %cst {dimension_numbers = #tpu.dot_dimension_numbers<[1], [0], [0], [1], [0, 0, 1, 1], [], []>} : vector<8x16xbf16>, vector<16x512xbf16>, vector<8x512xf32> -> vector<8x512xf32>
    %4 = arith.truncf %3 : vector<8x512xf32> to vector<8x512xbf16>
    %c0_3 = arith.constant 0 : index
    %c0_4 = arith.constant 0 : index
    %5 = vector.load %arg3[%c0_3, %c0_4] : memref<1x512xbf16, #tpu.memory_space<vmem>>, vector<1x512xbf16>
    %6 = vector.broadcast %5 : vector<1x512xbf16> to vector<8x512xbf16>
    %7 = arith.addf %4, %6 : vector<8x512xbf16>
    %cst_5 = arith.constant 0.000000e+00 : bf16
    %8 = vector.broadcast %cst_5 : bf16 to vector<8x512xbf16>
    %9 = arith.maximumf %7, %8 : vector<8x512xbf16>
    %c0_6 = arith.constant 0 : index
    %c0_7 = arith.constant 0 : index
    %10 = vector.load %arg4[%c0_6, %c0_7] : memref<512x384xbf16, #tpu.memory_space<vmem>>, vector<512x384xbf16>
    %cst_8 = arith.constant dense<0.000000e+00> : vector<8x384xf32>
    %11 = tpu.matmul %9, %10, %cst_8 {dimension_numbers = #tpu.dot_dimension_numbers<[1], [0], [0], [1], [0, 0, 1, 1], [], []>} : vector<8x512xbf16>, vector<512x384xbf16>, vector<8x384xf32> -> vector<8x384xf32>
    %12 = arith.truncf %11 : vector<8x384xf32> to vector<8x384xbf16>
    %c0_9 = arith.constant 0 : index
    %c0_10 = arith.constant 0 : index
    %13 = vector.load %arg5[%c0_9, %c0_10] : memref<1x384xbf16, #tpu.memory_space<vmem>>, vector<1x384xbf16>
    %14 = vector.broadcast %13 : vector<1x384xbf16> to vector<8x384xbf16>
    %15 = arith.addf %12, %14 : vector<8x384xbf16>
    %cst_11 = arith.constant 0.000000e+00 : bf16
    %16 = vector.broadcast %cst_11 : bf16 to vector<8x384xbf16>
    %17 = arith.maximumf %15, %16 : vector<8x384xbf16>
    %c0_12 = arith.constant 0 : index
    %c0_13 = arith.constant 0 : index
    %18 = vector.load %arg6[%c0_12, %c0_13] : memref<384x128xbf16, #tpu.memory_space<vmem>>, vector<384x128xbf16>
    %cst_14 = arith.constant dense<0.000000e+00> : vector<8x128xf32>
    %19 = tpu.matmul %17, %18, %cst_14 {dimension_numbers = #tpu.dot_dimension_numbers<[1], [0], [0], [1], [0, 0, 1, 1], [], []>} : vector<8x384xbf16>, vector<384x128xbf16>, vector<8x128xf32> -> vector<8x128xf32>
    %c0_15 = arith.constant 0 : index
    %c0_16 = arith.constant 0 : index
    %20 = vector.load %arg7[%c0_15, %c0_16] : memref<1x128xf32, #tpu.memory_space<vmem>>, vector<1x128xf32>
    %21 = vector.broadcast %20 : vector<1x128xf32> to vector<8x128xf32>
    %22 = arith.addf %19, %21 : vector<8x128xf32>
    %23 = math.tanh %22 : vector<8x128xf32>
    %cst_17 = arith.constant 2.000000e+00 : f32
    %24 = vector.broadcast %cst_17 : f32 to vector<8x128xf32>
    %25 = arith.mulf %23, %24 : vector<8x128xf32>
    %c0_18 = arith.constant 0 : index
    %c0_19 = arith.constant 0 : index
    %26 = vector.load %arg8[%c0_18, %c0_19] : memref<8x128xf32, #tpu.memory_space<vmem>>, vector<8x128xf32>
    tpu.vector_store %arg8[%c0_18, %c0_19], %25 {strides = array<i32>} : memref<8x128xf32, #tpu.memory_space<vmem>>, vector<8x128xf32>,
    return
  }
  func.func @transform_0(%arg0: i32) -> (i32, i32) {
    %c0_i32 = arith.constant 0 : i32
    %c0_i32_0 = arith.constant 0 : i32
    return %arg0, %c0_i32 : i32, i32
  }
  func.func @transform_1(%arg0: i32) -> (i32, i32) {
    %c0_i32 = arith.constant 0 : i32
    %c0_i32_0 = arith.constant 0 : i32
    %c0_i32_1 = arith.constant 0 : i32
    return %c0_i32, %c0_i32_0 : i32, i32
  }
  func.func @transform_2(%arg0: i32) -> (i32, i32) {
    %c0_i32 = arith.constant 0 : i32
    %c0_i32_0 = arith.constant 0 : i32
    %c0_i32_1 = arith.constant 0 : i32
    return %c0_i32, %c0_i32_0 : i32, i32
  }
  func.func @transform_3(%arg0: i32) -> (i32, i32) {
    %c0_i32 = arith.constant 0 : i32
    %c0_i32_0 = arith.constant 0 : i32
    %c0_i32_1 = arith.constant 0 : i32
    return %c0_i32, %c0_i32_0 : i32, i32
  }
  func.func @transform_4(%arg0: i32) -> (i32, i32) {
    %c0_i32 = arith.constant 0 : i32
    %c0_i32_0 = arith.constant 0 : i32
    %c0_i32_1 = arith.constant 0 : i32
    return %c0_i32, %c0_i32_0 : i32, i32
  }
  func.func @transform_5(%arg0: i32) -> (i32, i32) {
    %c0_i32 = arith.constant 0 : i32
    %c0_i32_0 = arith.constant 0 : i32
    %c0_i32_1 = arith.constant 0 : i32
    return %c0_i32, %c0_i32_0 : i32, i32
  }
  func.func @transform_6(%arg0: i32) -> (i32, i32) {
    %c0_i32 = arith.constant 0 : i32
    %c0_i32_0 = arith.constant 0 : i32
    %c0_i32_1 = arith.constant 0 : i32
    return %c0_i32, %c0_i32_0 : i32, i32
  }
  func.func @transform_7(%arg0: i32) -> (i32, i32) {
    %c0_i32 = arith.constant 0 : i32
    %c0_i32_0 = arith.constant 0 : i32
    return %arg0, %c0_i32 : i32, i32
  }
}

</mosaic_0001>

<bundles_post_ra>
// kernel: actor_forward.1
= control target key start
LH: loop header
LB: loop body
LE: loop exit
PB: predicated region body
PF: predicated region fallthrough
CT: control target
= control target key end

     0   :  { %12 = vsyncpa [#allocation3], 0  ;;  %s1994_s0 = inlined_call_operand.vmem [shape: f32[8,16], index: 0, kind: input, shape index: {}]   ;;  %s1995_s1 = inlined_call_operand.hbm [shape: bf16[16,512], index: 1, kind: input, shape index: {}]   ;;  %s1996_s2 = inlined_call_operand.vmem [shape: bf16[1,512], index: 2, kind: input, shape index: {}]   ;;  %s1997_s3 = inlined_call_operand.hbm [shape: bf16[512,384], index: 3, kind: input, shape index: {}]   ;;  %s1998_s4 = inlined_call_operand.vmem [shape: bf16[1,384], index: 4, kind: input, shape index: {}]   ;;  %s1999_s5 = inlined_call_operand.hbm [shape: bf16[384,128], index: 5, kind: input, shape index: {}]   ;;  %s2000_s6 = inlined_call_operand.vmem [shape: f32[1,128], index: 6, kind: input, shape index: {}]   ;;  %s2001_s7 = inlined_call_operand.vmem [shape: f32[8,128], index: 7, kind: output, shape index: {}]  }
   0x1   :  { %13 = vsyncpa [#allocation5], 0  ;;  %s1862_s24 = smov [#allocation4]   ;;  %s1792_s28 = scalar_lea.hbm %s1997_s3, 12288 }
   0x2   :  { %s35_s25 = sshll.u32 %s1862_s24, 4  ;;  %p1793_p0 = scmp.ne.s32.totalorder %s1997_s3, %s1792_s28  ;;  %s36_s25 = int_to_ptr.vmem [resolvable:$true] %s35_s25 }
   0x3   :  { %p1796_p1 = scmp.lt.u32.totalorder %s1792_s28, %s1997_s3 }
   0x5   :  { %p1798_p2 = pnand %p1796_p1, %p1793_p0 }
   0x7   :  { %1801 = shalt.err (!%p1798_p2)
}
   0x8   :  { %s1802_s10 = scalar_lea.vmem %s36_s25, 12288  ;;  %p1807_p4 = scmp.lt.s32.totalorder %s36_s25, %s36_s25 }
   0x9   :  { %p1803_p3 = scmp.ne.s32.totalorder %s36_s25, %s1802_s10  ;;  %p1808_p5 = scmp.lt.s32.totalorder %s1802_s10, %s1802_s10 }
   0xb   :  { %p1809_p6 = por %p1808_p5, %p1807_p4 }
   0xd   :  { %p1810_p7 = pnand %p1809_p6, %p1803_p3 }
   0xf   :  { %1813 = shalt.err (!%p1810_p7)
}
  0x10   :  { %s1863_s11 = smov 192   ;;  %s1864_s12 = smov 12  }
  0x11   :  { %41 = dma.hbm_to_vmem [thread:$0]  %s1997_s3, 12288, %s36_s25, [#allocation5], %s1863_s11, %s1863_s11, %s1864_s12  }
  0x12   :  { %s1865_s15 = smov [#allocation2]   ;;  %s1814_s19 = scalar_lea.hbm %s1995_s1, 512 }
  0x13   :  { %s21_s16 = sshll.u32 %s1865_s15, 4  ;;  %p1815_p8 = scmp.ne.s32.totalorder %s1995_s1, %s1814_s19  ;;  %s22_s16 = int_to_ptr.vmem [resolvable:$true] %s21_s16 }
  0x14   :  { %p1818_p9 = scmp.lt.u32.totalorder %s1814_s19, %s1995_s1 }
  0x16   :  { %p1820_p10 = pnand %p1818_p9, %p1815_p8 }
  0x18   :  { %1823 = shalt.err (!%p1820_p10)
}
  0x19   :  { %s1824_s24 = scalar_lea.vmem %s22_s16, 512  ;;  %p1829_p12 = scmp.lt.s32.totalorder %s22_s16, %s22_s16 }
  0x1a   :  { %p1825_p11 = scmp.ne.s32.totalorder %s22_s16, %s1824_s24  ;;  %p1830_p13 = scmp.lt.s32.totalorder %s1824_s24, %s1824_s24 }
  0x1c   :  { %p1831_p0 = por %p1830_p13, %p1829_p12 }
  0x1e   :  { %p1832_p1 = pnand %p1831_p0, %p1825_p11 }
  0x20   :  { %1835 = shalt.err (!%p1832_p1)
}
  0x21   :  { %s1866_s3 = smov 256   ;;  %s1867_s25 = smov 16  }
  0x22   :  { %27 = dma.hbm_to_vmem [thread:$0]  %s1995_s1, 512, %s22_s16, [#allocation3], %s1866_s3, %s1866_s3, %s1867_s25  }
  0x23   :  { %s1868_s28 = smov [#allocation6]   ;;  %s1836_s9 = scalar_lea.hbm %s1999_s5, 3072 }
  0x24   :  { %s49_s29 = sshll.u32 %s1868_s28, 4  ;;  %p1837_p2 = scmp.ne.s32.totalorder %s1999_s5, %s1836_s9  ;;  %s50_s29 = int_to_ptr.vmem [resolvable:$true] %s49_s29 }
  0x25   :  { %p1840_p3 = scmp.lt.u32.totalorder %s1836_s9, %s1999_s5 }
  0x27   :  { %p1842_p4 = pnand %p1840_p3, %p1837_p2 }
  0x29   :  { %1845 = shalt.err (!%p1842_p4)
}
  0x2a   :  { %s1846_s14 = scalar_lea.vmem %s50_s29, 3072  ;;  %p1851_p6 = scmp.lt.s32.totalorder %s50_s29, %s50_s29 }
  0x2b   :  { %p1847_p5 = scmp.ne.s32.totalorder %s50_s29, %s1846_s14  ;;  %p1852_p7 = scmp.lt.s32.totalorder %s1846_s14, %s1846_s14 }
  0x2d   :  { %p1853_p8 = por %p1852_p7, %p1851_p6 }
  0x2f   :  { %p1854_p9 = pnand %p1853_p8, %p1847_p5 }
  0x31   :  { %1857 = shalt.err (!%p1854_p9)
}
  0x32   :  { %s1869_s1 = smov 64   ;;  %s1870_s15 = smov 4  }
  0x33   :  { %55 = dma.hbm_to_vmem [thread:$0]  %s1999_s5, 3072, %s50_s29, [#allocation5], %s1869_s1, %s1869_s1, %s1870_s15  }
  0x34   :  { %1858 = dma.done.wait [#allocation3], 512  }
  0x35   :  { %1859 = vsyncadd [#allocation3], 4294966784 }
  0x36   :  { %1860 = dma.done.wait [#allocation5], 15360  }
  0x37   :  { %1861 = vsyncadd [#allocation5], 4294951936  ;;  %v1871_v0 = vmov 0   ;;  %v1632_v1 = vld [vmem:[#allocation2 + $0x4] ss:$16 sps:$4 sm:$0xff]   ;;  %vm94_vm0 = vcmask 130048   ;;  %v197_v59 = vlaneseq }
  0x38   :  { %130 = vmatprep.mubr.bf16.mxu0 %v1871_v0  ;;  %171 = vmatprep.mubr.bf16.mxu1 %v1871_v0  ;;  %v1634_v2 = vld [vmem:[#allocation2] ss:$16 sps:$4 sm:$0xff]   ;;  %v1635_v5 = vld [vmem:[#allocation2 + $0xc] ss:$16 sps:$4 sm:$0xff]   ;;  %v1637_v6 = vld [vmem:[#allocation2 + $0x8] ss:$16 sps:$4 sm:$0xff]  }
  0x39   :  { %v68_v3 = vld [vmem:[%s1994_s0] sm:$0xff]  ;;  %98 = vmatprep.subr.bf16.mxu0 %v1632_v1  ;;  %139 = vmatprep.subr.bf16.mxu1 %v1635_v5  ;;  %v1643_v9 = vld [vmem:[#allocation4 + $0x1c] ss:$12 sps:$4 sm:$0xff]   ;;  %v1649_v13 = vld [vmem:[#allocation4 + $0x4c] ss:$12 sps:$4 sm:$0xff]   ;;  %v198_v61 = vshrl.u32 %v197_v59, 7 }
  0x3a   :  { %v69_v4 = vpack.c.bf16 %v68_v3, %v68_v3  ;;  %99 = vmatpush1.bf16.msra.mxu0 %v1634_v2  ;;  %v1638_v7 = vld [vmem:[#allocation4] ss:$12 sps:$4 sm:$0xff]   ;;  %v1640_v8 = vld [vmem:[#allocation4 + $0x4] ss:$12 sps:$4 sm:$0xff]   ;;  %140 = vmatpush1.bf16.msra.mxu1 %v1637_v6  ;;  %v1647_v14 = vld [vmem:[#allocation4 + $0x48] ss:$12 sps:$4 sm:$0xff]  }
  0x3b   :  { %886 = vmatprep.subr.bf16.mxu0 %v1640_v8  ;;  %v1641_v10 = vld [vmem:[#allocation4 + $0x18] ss:$12 sps:$4 sm:$0xff]   ;;  %v1646_v11 = vld [vmem:[#allocation4 + $0x34] ss:$12 sps:$4 sm:$0xff]   ;;  %v1644_v12 = vld [vmem:[#allocation4 + $0x30] ss:$12 sps:$4 sm:$0xff]  }
  0x3c   :  { %v1652_v15 = vld [vmem:[#allocation4 + $0x64] ss:$12 sps:$4 sm:$0xff]   ;;  %v1665_v16 = vld [vmem:[#allocation4 + $0xc8] ss:$12 sps:$4 sm:$0xff]   ;;  %v1650_v18 = vld [vmem:[#allocation4 + $0x60] ss:$12 sps:$4 sm:$0xff]  }
  0x3d   :  { %1395 = vmatmul.mubr.msk.bf16.vlgmr.msra.gmra.mrb[0].mxu0 %vm94_vm0, %v69_v4  ;;  %1396 = vmatmul.mubr.msk.bf16.vlgmr.msra.gmra.mrb[0].mxu1 %vm94_vm0, %v69_v4  ;;  %v1666_v17 = vld [vmem:[#allocation4 + $0x8] ss:$12 sps:$4 sm:$0xff]   ;;  %v1670_v20 = vld [vmem:[#allocation4 + $0xe0] ss:$12 sps:$4 sm:$0xff]   ;;  %v1653_v22 = vld [vmem:[#allocation4 + $0x78] ss:$12 sps:$4 sm:$0xff]  }
  0x3e   :  { %887 = vmatpush1.bf16.msra.mxu0 %v1638_v7  ;;  %1520 = vmatprep.subr.bf16.mxu1 %v1665_v16  ;;  %v1655_v19 = vld [vmem:[#allocation4 + $0x7c] ss:$12 sps:$4 sm:$0xff]   ;;  %v1671_v21 = vld [vmem:[#allocation4 + $0x20] ss:$12 sps:$4 sm:$0xff]   ;;  %v1675_v23 = vld [vmem:[#allocation4 + $0xf8] ss:$12 sps:$4 sm:$0xff]  }
  0x3f   :  { %888 = vmatprep.subr.bf16.mxu0 %v1643_v9  ;;  %1521 = vmatpush3.bf16.msra.mxu1 %v1666_v17  ;;  %v1676_v24 = vld [vmem:[#allocation4 + $0x38] ss:$12 sps:$4 sm:$0xff]   ;;  %v1658_v25 = vld [vmem:[#allocation4 + $0x94] ss:$12 sps:$4 sm:$0xff]   ;;  %v1680_v26 = vld [vmem:[#allocation4 + $0x110] ss:$12 sps:$4 sm:$0xff]  }
  0x40   :  { %1522 = vmatprep.subr.bf16.mxu1 %v1670_v20  ;;  %v1681_v27 = vld [vmem:[#allocation4 + $0x50] ss:$12 sps:$4 sm:$0xff]   ;;  %v1661_v29 = vld [vmem:[#allocation4 + $0xac] ss:$12 sps:$4 sm:$0xff]   ;;  %v1685_v30 = vld [vmem:[#allocation4 + $0x128] ss:$12 sps:$4 sm:$0xff]  }
  0x41   :  { %v1656_v28 = vld [vmem:[#allocation4 + $0x90] ss:$12 sps:$4 sm:$0xff]   ;;  %v1686_v31 = vld [vmem:[#allocation4 + $0x68] ss:$12 sps:$4 sm:$0xff]   ;;  %v1690_v34 = vld [vmem:[#allocation4 + $0x140] ss:$12 sps:$4 sm:$0xff]  }
  0x42   :  { %889 = vmatpush1.bf16.msra.mxu0 %v1641_v10  ;;  %v1659_v32 = vld [vmem:[#allocation4 + $0xa8] ss:$12 sps:$4 sm:$0xff]   ;;  %v1664_v33 = vld [vmem:[#allocation4 + $0xc4] ss:$12 sps:$4 sm:$0xff]   ;;  %v1662_v35 = vld [vmem:[#allocation4 + $0xc0] ss:$12 sps:$4 sm:$0xff]  }
  0x43   :  { %890 = vmatprep.subr.bf16.mxu0 %v1646_v11  ;;  %1523 = vmatpush3.bf16.msra.mxu1 %v1671_v21  ;;  %v1691_v36 = vld [vmem:[#allocation4 + $0x80] ss:$12 sps:$4 sm:$0xff]   ;;  %v1669_v37 = vld [vmem:[#allocation4 + $0xdc] ss:$12 sps:$4 sm:$0xff]   ;;  %v1667_v38 = vld [vmem:[#allocation4 + $0xd8] ss:$12 sps:$4 sm:$0xff]  }
  0x44   :  { %1524 = vmatprep.subr.bf16.mxu1 %v1675_v23  ;;  %v1674_v39 = vld [vmem:[#allocation4 + $0xf4] ss:$12 sps:$4 sm:$0xff]   ;;  %v1672_v40 = vld [vmem:[#allocation4 + $0xf0] ss:$12 sps:$4 sm:$0xff]   ;;  %v1679_v41 = vld [vmem:[#allocation4 + $0x10c] ss:$12 sps:$4 sm:$0xff]  }
  0x45   :  { %v1677_v42 = vld [vmem:[#allocation4 + $0x108] ss:$12 sps:$4 sm:$0xff]   ;;  %v1684_v43 = vld [vmem:[#allocation4 + $0x124] ss:$12 sps:$4 sm:$0xff]   ;;  %v1682_v44 = vld [vmem:[#allocation4 + $0x120] ss:$12 sps:$4 sm:$0xff]  }
  0x46   :  { %891 = vmatpush1.bf16.msra.mxu0 %v1644_v12  ;;  %v1689_v45 = vld [vmem:[#allocation4 + $0x13c] ss:$12 sps:$4 sm:$0xff]   ;;  %v1687_v46 = vld [vmem:[#allocation4 + $0x138] ss:$12 sps:$4 sm:$0xff]   ;;  %v1694_v47 = vld [vmem:[#allocation4 + $0x154] ss:$12 sps:$4 sm:$0xff]  }
  0x47   :  { %892 = vmatprep.subr.bf16.mxu0 %v1649_v13  ;;  %1525 = vmatpush3.bf16.msra.mxu1 %v1676_v24  ;;  %v1695_v48 = vld [vmem:[#allocation4 + $0x158] ss:$12 sps:$4 sm:$0xff]   ;;  %v1692_v49 = vld [vmem:[#allocation4 + $0x150] ss:$12 sps:$4 sm:$0xff]   ;;  %v1697_v53 = vld [vmem:[#allocation4 + $0x168] ss:$12 sps:$4 sm:$0xff]  }
  0x48   :  { %1526 = vmatprep.subr.bf16.mxu1 %v1680_v26  ;;  %v1696_v50 = vld [vmem:[#allocation4 + $0x98] ss:$12 sps:$4 sm:$0xff]   ;;  %v1700_v52 = vld [vmem:[#allocation4 + $0x170] ss:$12 sps:$4 sm:$0xff]   ;;  %v1705_v56 = vld [vmem:[#allocation4 + $0x248] ss:$12 sps:$4 sm:$0xff]  }
  0x49   :  { %v1699_v51 = vld [vmem:[#allocation4 + $0x16c] ss:$12 sps:$4 sm:$0xff]   ;;  %v1701_v54 = vld [vmem:[#allocation4 + $0xb0] ss:$12 sps:$4 sm:$0xff]   ;;  %v1872_v57 = vmov 1966171168  }
  0x4a   :  { %893 = vmatpush1.bf16.msra.mxu0 %v1647_v14  ;;  %v1704_v55 = vld [vmem:[#allocation4 + $0x184] ss:$12 sps:$4 sm:$0xff]   ;;  %v195_v58 = vunpack.c.l.s4 %v1872_v57  ;;  %v1397_v62 = vld.sshfl [vmem:[%s1996_s2] sm:$0x33 pattern:$0x75316420] }
  0x4b   :  { %894 = vmatprep.subr.bf16.mxu0 %v1652_v15  ;;  %1527 = vmatpush3.bf16.msra.mxu1 %v1681_v27  ;;  %v193_v1 = vcombine.high %v1397_v62, %v1397_v62  ;;  %v1963_v6 = vsub.s32 0, %v198_v61  ;;  %v1702_v26 = vld [vmem:[#allocation4 + $0x180] ss:$12 sps:$4 sm:$0xff]   ;;  %v1706_v27 = vld [vmem:[#allocation4 + $0x188] ss:$12 sps:$4 sm:$0xff]   ;;  %vm1874_vm1 = vmmov 0  }
  0x4c   :  { %1528 = vmatprep.subr.bf16.mxu1 %v1685_v30  ;;  %v196_v60 = vunpack.c.0.s8 %v195_v58  ;;  %v1709_v30 = vld [vmem:[#allocation4 + $0x19c] ss:$12 sps:$4 sm:$0xff]   ;;  %v1736_v58 = vld [vmem:[#allocation4 + $0x218] ss:$12 sps:$4 sm:$0xff]  }
  0x4d   :  { %v1732_v57 = vld [vmem:[#allocation4 + $0x210] ss:$12 sps:$4 sm:$0xff]   ;;  %v1739_v59 = vld [vmem:[#allocation4 + $0x22c] ss:$12 sps:$4 sm:$0xff]  }
  0x4e   :  { %895 = vmatpush1.bf16.msra.mxu0 %v1650_v18  ;;  %v1959_v63 = vsub.s32 %v196_v60, %v198_v61  ;;  %v1740_v60 = vld [vmem:[#allocation4 + $0x2f0] ss:$12 sps:$4 sm:$0xff]  }
  0x4f   :  { %896 = vmatprep.subr.bf16.mxu0 %v1655_v19  ;;  %1529 = vmatpush3.bf16.msra.mxu1 %v1686_v31  ;;  %v1710_v31 = vld [vmem:[#allocation4 + $0x260] ss:$12 sps:$4 sm:$0xff]  }
  0x50   :  { %1530 = vmatprep.subr.bf16.mxu1 %v1690_v34  ;;  %v200_v2 = vrot.slane %v1397_v62, %v1959_v63  ;;  %v207_v3 = vrot.slane %v193_v1, %v1959_v63  ;;  %v1711_v34 = vld [vmem:[#allocation4 + $0x1a0] ss:$12 sps:$4 sm:$0xff]   ;;  %v1737_v62 = vld [vmem:[#allocation4 + $0x228] ss:$12 sps:$4 sm:$0xff]   ;;  %v1741_v1 = vld [vmem:[#allocation4 + $0x230] ss:$12 sps:$4 sm:$0xff]  }
  0x52   :  { %897 = vmatpush1.bf16.msra.mxu0 %v1653_v22  ;;  %v209_v4 = vcombine.high %v207_v3, %v207_v3  ;;  %v211_v5 = vpack.i.b16 %v200_v2, %v200_v2  ;;  %v218_v7 = vpack.i.b16 %v207_v3, %v207_v3 }
  0x53   :  { %898 = vmatprep.subr.bf16.mxu0 %v1658_v25  ;;  %1531 = vmatpush3.bf16.msra.mxu1 %v1691_v36  ;;  %v1715_v36 = vld [vmem:[#allocation4 + $0x278] ss:$12 sps:$4 sm:$0xff]  }
  0x54   :  { %1532 = vmatprep.subr.bf16.mxu1 %v1695_v48  ;;  %v232_v8 = vpack.i.b16 %v209_v4, %v209_v4  ;;  %v216_v9 = vrot.slane %v211_v5, %v1963_v6  ;;  %v223_v11 = vrot.slane %v218_v7, %v1963_v6  ;;  %v1729_v48 = vld [vmem:[#allocation4 + $0x1fc] ss:$12 sps:$4 sm:$0xff]   ;;  %v1742_v4 = vld [vmem:[#allocation4 + $0x240] ss:$12 sps:$4 sm:$0xff]   ;;  %v1745_v7 = vld [vmem:[#allocation4 + $0x258] ss:$12 sps:$4 sm:$0xff]  }
  0x55   :  { %v1747_v5 = vld [vmem:[#allocation4 + $0x25c] ss:$12 sps:$4 sm:$0xff]  }
  0x56   :  { %899 = vmatpush1.bf16.msra.mxu0 %v1656_v28  ;;  %v237_v17 = vrot.slane %v232_v8, %v1963_v6  ;;  %v1750_v8 = vld [vmem:[#allocation4 + $0x274] ss:$12 sps:$4 sm:$0xff]  }
  0x57   :  { %900 = vmatprep.subr.bf16.mxu0 %v1661_v29  ;;  %1533 = vmatpush3.bf16.msra.mxu1 %v1696_v50 }
  0x58   :  { %1534 = vmatprep.subr.bf16.mxu1 %v1700_v52  ;;  %v1731_v52 = vld [vmem:[#allocation4 + $0x200] ss:$12 sps:$4 sm:$0xff]  }
  0x5a   :  { %901 = vmatpush1.bf16.msra.mxu0 %v1659_v32 }
  0x5b   :  { %902 = vmatprep.subr.bf16.mxu0 %v1664_v33  ;;  %1535 = vmatpush3.bf16.msra.mxu1 %v1701_v54  ;;  %v1707_v33 = vld [vmem:[#allocation4 + $0x198] ss:$12 sps:$4 sm:$0xff]  }
  0x5c   :  { %1542 = vmatprep.subr.bf16.mxu1 %v1705_v56  ;;  %v1735_v54 = vld [vmem:[#allocation4 + $0x2d8] ss:$12 sps:$4 sm:$0xff]  }
  0x5e   :  { %903 = vmatpush1.bf16.msra.mxu0 %v1662_v35  ;;  %v1714_v35 = vld [vmem:[#allocation4 + $0x1b4] ss:$12 sps:$4 sm:$0xff]  }
  0x5f   :  { %904 = vmatprep.subr.bf16.mxu0 %v1669_v37  ;;  %v1712_v37 = vld [vmem:[#allocation4 + $0x1b0] ss:$12 sps:$4 sm:$0xff]  }
  0x62   :  { %905 = vmatpush1.bf16.msra.mxu0 %v1667_v38  ;;  %v1716_v38 = vld [vmem:[#allocation4 + $0x1b8] ss:$12 sps:$4 sm:$0xff]  }
  0x63   :  { %906 = vmatprep.subr.bf16.mxu0 %v1674_v39  ;;  %v1719_v39 = vld [vmem:[#allocation4 + $0x1cc] ss:$12 sps:$4 sm:$0xff]  }
  0x66   :  { %907 = vmatpush1.bf16.msra.mxu0 %v1672_v40  ;;  %v1720_v40 = vld [vmem:[#allocation4 + $0x290] ss:$12 sps:$4 sm:$0xff]  }
  0x67   :  { %908 = vmatprep.subr.bf16.mxu0 %v1679_v41  ;;  %v1717_v41 = vld [vmem:[#allocation4 + $0x1c8] ss:$12 sps:$4 sm:$0xff]  }
  0x6a   :  { %909 = vmatpush1.bf16.msra.mxu0 %v1677_v42  ;;  %v1721_v42 = vld [vmem:[#allocation4 + $0x1d0] ss:$12 sps:$4 sm:$0xff]  }
  0x6b   :  { %910 = vmatprep.subr.bf16.mxu0 %v1684_v43  ;;  %v1724_v43 = vld [vmem:[#allocation4 + $0x1e4] ss:$12 sps:$4 sm:$0xff]  }
  0x6e   :  { %911 = vmatpush1.bf16.msra.mxu0 %v1682_v44  ;;  %v1725_v44 = vld [vmem:[#allocation4 + $0x2a8] ss:$12 sps:$4 sm:$0xff]  }
  0x6f   :  { %912 = vmatprep.subr.bf16.mxu0 %v1689_v45  ;;  %v208_v45 = vcombine.high %v200_v2, %v200_v2  ;;  %v1744_v2 = vld [vmem:[#allocation4 + $0x244] ss:$12 sps:$4 sm:$0xff]  }
  0x71   :  { %v225_v50 = vpack.i.b16 %v208_v45, %v208_v45 }
  0x72   :  { %913 = vmatpush1.bf16.msra.mxu0 %v1687_v46  ;;  %v1722_v46 = vld [vmem:[#allocation4 + $0x1e0] ss:$12 sps:$4 sm:$0xff]  }
  0x73   :  { %914 = vmatprep.subr.bf16.mxu0 %v1694_v47  ;;  %v1726_v47 = vld [vmem:[#allocation4 + $0x1e8] ss:$12 sps:$4 sm:$0xff]   ;;  %v230_v56 = vrot.slane %v225_v50, %v1963_v6 }
  0x76   :  { %915 = vmatpush1.bf16.msra.mxu0 %v1692_v49  ;;  %v1730_v49 = vld [vmem:[#allocation4 + $0x2c0] ss:$12 sps:$4 sm:$0xff]  }
  0x77   :  { %916 = vmatprep.subr.bf16.mxu0 %v1699_v51  ;;  %v1727_v51 = vld [vmem:[#allocation4 + $0x1f8] ss:$12 sps:$4 sm:$0xff]  }
  0x7a   :  { %917 = vmatpush1.bf16.msra.mxu0 %v1697_v53  ;;  %v1734_v53 = vld [vmem:[#allocation4 + $0x214] ss:$12 sps:$4 sm:$0xff]  }
  0x7b   :  { %927 = vmatprep.subr.bf16.mxu0 %v1704_v55 }
 0x110   :  { %v132_v10 = vpop.f32.mrb[0].mxu0  ;;  %v1967_v16 = vpop.f32.mrb[0].mxu1 }
 0x111   :  { %v180_v12 = vpack.c.bf16 %v132_v10, %v132_v10  ;;  %v134_v13 = vpop.f32.mrb[1].mxu0  ;;  %v175_v20 = vpop.f32.mrb[1].mxu1  ;;  %v182_v55 = vpack.c.bf16 %v1967_v16, %v1967_v16  ;;  %v1753_v10 = vld [vmem:[#allocation4 + $0x28c] ss:$12 sps:$4 sm:$0xff]   ;;  %v1762_v16 = vld [vmem:[#allocation4 + $0x2d4] ss:$12 sps:$4 sm:$0xff]  }
 0x112   :  { %v181_v14 = vpack.c.bf16 %v134_v13, %v134_v13  ;;  %v136_v15 = vpop.f32.mrb[2].mxu0  ;;  %v183_v22 = vpack.c.bf16 %v175_v20, %v175_v20  ;;  %v177_v23 = vpop.f32.mrb[2].mxu1  ;;  %v1754_v13 = vld [vmem:[#allocation4 + $0x2a0] ss:$12 sps:$4 sm:$0xff]  }
 0x113   :  { %v238_v18 = vadd.bf16 %v216_v9, %v180_v12  ;;  %v137_v19 = vpop.f32.mrb[3].mxu0  ;;  %v178_v24 = vpop.f32.mrb[3].mxu1  ;;  %v240_v61 = vadd.bf16 %v230_v56, %v182_v55  ;;  %v1748_v9 = vld [vmem:[#allocation4 + $0x270] ss:$12 sps:$4 sm:$0xff]   ;;  %v1757_v15 = vld [vmem:[#allocation4 + $0x2b8] ss:$12 sps:$4 sm:$0xff]  }
 0x114   :  { %v239_v21 = vadd.bf16 %v223_v11, %v181_v14  ;;  %v241_v28 = vadd.bf16 %v237_v17, %v183_v22  ;;  %v1751_v11 = vld [vmem:[#allocation4 + $0x288] ss:$12 sps:$4 sm:$0xff]   ;;  %v1756_v12 = vld [vmem:[#allocation4 + $0x2a4] ss:$12 sps:$4 sm:$0xff]  }
 0x115   :  { %v242_v29 = vmax.bf16 %v1871_v0, %v238_v18  ;;  %v244_v3 = vmax.bf16 %v1871_v0, %v240_v61  ;;  %v1759_v14 = vld [vmem:[#allocation4 + $0x2bc] ss:$12 sps:$4 sm:$0xff]   ;;  %v1765_v18 = vld [vmem:[#allocation4 + $0x2ec] ss:$12 sps:$4 sm:$0xff]   ;;  %v1766_v20 = vld [vmem:[#allocation6 + $0x40] sm:$0xff]  }
 0x116   :  { %v243_v25 = vmax.bf16 %v1871_v0, %v239_v21  ;;  %v245_v32 = vmax.bf16 %v1871_v0, %v241_v28  ;;  %v1760_v17 = vld [vmem:[#allocation4 + $0x2d0] ss:$12 sps:$4 sm:$0xff]   ;;  %v1763_v19 = vld [vmem:[#allocation4 + $0x2e8] ss:$12 sps:$4 sm:$0xff]   ;;  %v1767_v21 = vld [vmem:[#allocation6] sm:$0xff]  }
 0x117   :  { %v1768_v22 = vld [vmem:[#allocation6 + $0x48] sm:$0xff]   ;;  %v1770_v24 = vld [vmem:[#allocation6 + $0x50] sm:$0xff]   ;;  %v1774_v28 = vld [vmem:[#allocation6 + $0x60] sm:$0xff]  }
 0x118   :  { %918 = vmatprep.mubr.bf16.mxu0 %v243_v25  ;;  %1000 = vmatprep.mubr.bf16.mxu1 %v243_v25  ;;  %v1769_v23 = vld [vmem:[#allocation6 + $0x8] sm:$0xff]   ;;  %v1771_v25 = vld [vmem:[#allocation6 + $0x10] sm:$0xff]  }
 0x119   :  { %919 = vmatmul.mubr.bf16.vlgmr.msra.gmra.mrb[4].mxu0 %v242_v29  ;;  %1001 = vmatmul.mubr.bf16.vlgmr.msra.gmra.mrb[4].mxu1 %v242_v29  ;;  %v1775_v29 = vld [vmem:[#allocation6 + $0x20] sm:$0xff]  }
 0x11a   :  { %928 = vmatpush1.bf16.msra.mxu0 %v1702_v26  ;;  %1543 = vmatpush3.bf16.msra.mxu1 %v1706_v27  ;;  %v1772_v26 = vld [vmem:[#allocation6 + $0x58] sm:$0xff]  }
 0x11b   :  { %929 = vmatprep.subr.bf16.mxu0 %v1709_v30  ;;  %1544 = vmatprep.subr.bf16.mxu1 %v1710_v31  ;;  %v1773_v27 = vld [vmem:[#allocation6 + $0x18] sm:$0xff]   ;;  %v1776_v30 = vld [vmem:[#allocation6 + $0x68] sm:$0xff]  }
 0x11c   :  { %1040 = vmatprep.mubr.bf16.mxu1 %v245_v32  ;;  %959 = vmatprep.mubr.bf16.mxu0 %v245_v32  ;;  %v1777_v31 = vld [vmem:[#allocation6 + $0x28] sm:$0xff]   ;;  %v1778_v32 = vld [vmem:[#allocation6 + $0x70] sm:$0xff]  }
 0x11e   :  { %930 = vmatpush1.bf16.msra.mxu0 %v1707_v33  ;;  %1545 = vmatpush3.bf16.msra.mxu1 %v1711_v34  ;;  %v1779_v33 = vld [vmem:[#allocation6 + $0x30] sm:$0xff]   ;;  %v1780_v34 = vld [vmem:[#allocation6 + $0x78] sm:$0xff]  }
 0x11f   :  { %931 = vmatprep.subr.bf16.mxu0 %v1714_v35  ;;  %1546 = vmatprep.subr.bf16.mxu1 %v1715_v36  ;;  %v1781_v35 = vld [vmem:[#allocation6 + $0x38] sm:$0xff]   ;;  %v1873_v36 = vmov 0.0  }
 0x122   :  { %932 = vmatpush1.bf16.msra.mxu0 %v1712_v37  ;;  %1547 = vmatpush3.bf16.msra.mxu1 %v1716_v38 }
 0x123   :  { %933 = vmatprep.subr.bf16.mxu0 %v1719_v39  ;;  %1548 = vmatprep.subr.bf16.mxu1 %v1720_v40 }
 0x126   :  { %934 = vmatpush1.bf16.msra.mxu0 %v1717_v41  ;;  %1549 = vmatpush3.bf16.msra.mxu1 %v1721_v42 }
 0x127   :  { %935 = vmatprep.subr.bf16.mxu0 %v1724_v43  ;;  %1550 = vmatprep.subr.bf16.mxu1 %v1725_v44 }
 0x12a   :  { %936 = vmatpush1.bf16.msra.mxu0 %v1722_v46  ;;  %1551 = vmatpush3.bf16.msra.mxu1 %v1726_v47 }
 0x12b   :  { %937 = vmatprep.subr.bf16.mxu0 %v1729_v48  ;;  %1552 = vmatprep.subr.bf16.mxu1 %v1730_v49  ;;  %v1494_v48 = vld.sshfl [vmem:[%s1998_s4] sm:$0x13 pattern:$0x75316420] }
 0x12c   :  { %v1060_v49 = vcombine.high %v1494_v48, %v1494_v48 }
 0x12e   :  { %938 = vmatpush1.bf16.msra.mxu0 %v1727_v51  ;;  %1553 = vmatpush3.bf16.msra.mxu1 %v1731_v52  ;;  %v1074_v50 = vrot.slane %v1060_v49, %v1959_v63  ;;  %v1067_v51 = vrot.slane %v1494_v48, %v1959_v63  ;;  %v1783_v63 = vld [vmem:[#allocation6 + $0x88] sm:$0xff]  }
 0x12f   :  { %939 = vmatprep.subr.bf16.mxu0 %v1734_v53  ;;  %1554 = vmatprep.subr.bf16.mxu1 %v1735_v54 }
 0x130   :  { %v1077_v52 = vpack.i.b16 %v1067_v51, %v1067_v51  ;;  %v1084_v53 = vpack.i.b16 %v1074_v50, %v1074_v50 }
 0x132   :  { %940 = vmatpush1.bf16.msra.mxu0 %v1732_v57  ;;  %1555 = vmatpush3.bf16.msra.mxu1 %v1736_v58  ;;  %v1082_v54 = vrot.slane %v1077_v52, %v1963_v6  ;;  %v1089_v56 = vrot.slane %v1084_v53, %v1963_v6 }
 0x133   :  { %941 = vmatprep.subr.bf16.mxu0 %v1739_v59  ;;  %1556 = vmatprep.subr.bf16.mxu1 %v1740_v60 }
 0x136   :  { %942 = vmatpush1.bf16.msra.mxu0 %v1737_v62  ;;  %1557 = vmatpush3.bf16.msra.mxu1 %v1741_v1 }
 0x137   :  { %943 = vmatprep.subr.bf16.mxu0 %v1744_v2  ;;  %1564 = vmatprep.subr.bf16.mxu1 %v1766_v20 }
 0x139   :  { %1041 = vmatmul.mubr.bf16.vlgmr.msra.gmra.mrb[8].mxu1 %v244_v3 }
 0x13a   :  { %944 = vmatpush1.bf16.msra.mxu0 %v1742_v4  ;;  %1565 = vmatpush3.bf16.msra.mxu1 %v1767_v21 }
 0x13b   :  { %945 = vmatprep.subr.bf16.mxu0 %v1747_v5  ;;  %1566 = vmatprep.subr.bf16.mxu1 %v1768_v22  ;;  %v1784_v5 = vld [vmem:[#allocation6 + $0x90] sm:$0xff]  }
 0x13e   :  { %946 = vmatpush1.bf16.msra.mxu0 %v1745_v7  ;;  %1567 = vmatpush3.bf16.msra.mxu1 %v1769_v23  ;;  %v1785_v7 = vld [vmem:[#allocation6 + $0x98] sm:$0xff]   ;;  %v1495_v23 = vld [vmem:[%s2000_s6] ss:$0 sm:$0xff] }
 0x13f   :  { %947 = vmatprep.subr.bf16.mxu0 %v1750_v8  ;;  %1568 = vmatprep.subr.bf16.mxu1 %v1770_v24  ;;  %v1786_v8 = vld [vmem:[#allocation6 + $0xa0] sm:$0xff]  }
 0x142   :  { %948 = vmatpush1.bf16.msra.mxu0 %v1748_v9  ;;  %1569 = vmatpush3.bf16.msra.mxu1 %v1771_v25  ;;  %v1075_v9 = vcombine.high %v1067_v51, %v1067_v51 }
 0x143   :  { %949 = vmatprep.subr.bf16.mxu0 %v1753_v10  ;;  %1570 = vmatprep.subr.bf16.mxu1 %v1772_v26  ;;  %v1787_v10 = vld [vmem:[#allocation6 + $0xa8] sm:$0xff]  }
 0x146   :  { %950 = vmatpush1.bf16.msra.mxu0 %v1751_v11  ;;  %1571 = vmatpush3.bf16.msra.mxu1 %v1773_v27  ;;  %v1091_v11 = vpack.i.b16 %v1075_v9, %v1075_v9 }
 0x147   :  { %951 = vmatprep.subr.bf16.mxu0 %v1756_v12  ;;  %1572 = vmatprep.subr.bf16.mxu1 %v1774_v28  ;;  %v1788_v12 = vld [vmem:[#allocation6 + $0xb0] sm:$0xff]  }
 0x14a   :  { %952 = vmatpush1.bf16.msra.mxu0 %v1754_v13  ;;  %1573 = vmatpush3.bf16.msra.mxu1 %v1775_v29 }
 0x14b   :  { %953 = vmatprep.subr.bf16.mxu0 %v1759_v14  ;;  %1574 = vmatprep.subr.bf16.mxu1 %v1776_v30  ;;  %v1096_v14 = vrot.slane %v1091_v11, %v1963_v6 }
 0x14e   :  { %954 = vmatpush1.bf16.msra.mxu0 %v1757_v15  ;;  %1575 = vmatpush3.bf16.msra.mxu1 %v1777_v31  ;;  %v1789_v15 = vld [vmem:[#allocation6 + $0xb8] sm:$0xff]  }
 0x14f   :  { %955 = vmatprep.subr.bf16.mxu0 %v1762_v16  ;;  %1576 = vmatprep.subr.bf16.mxu1 %v1778_v32 }
 0x152   :  { %956 = vmatpush1.bf16.msra.mxu0 %v1760_v17  ;;  %1577 = vmatpush3.bf16.msra.mxu1 %v1779_v33 }
 0x153   :  { %957 = vmatprep.subr.bf16.mxu0 %v1765_v18  ;;  %1578 = vmatprep.subr.bf16.mxu1 %v1780_v34 }
 0x156   :  { %958 = vmatpush1.bf16.msra.mxu0 %v1763_v19  ;;  %1579 = vmatpush3.bf16.msra.mxu1 %v1781_v35 }
 0x157   :  { %1595 = vmatprep.subr.bf16.mxu1 %v1873_v36 }
 0x159   :  { %960 = vmatmul.mubr.bf16.vlgmr.msra.gmra.mrb[4].mxu0 %v244_v3  ;;  %v1782_v3 = vld [vmem:[#allocation6 + $0x80] sm:$0xff]  }
 0x1ec   :  { %v1536_v37 = vpop.f32.mrb[4].mxu1 }
 0x1ed   :  { %v1537_v38 = vpop.f32.mrb[5].mxu1 }
 0x1ee   :  { %v1538_v39 = vadd.f32 %v1537_v38, %v1536_v37  ;;  %v1539_v40 = vpop.f32.mrb[6].mxu1 }
 0x1ef   :  { %v1540_v41 = vpop.f32.mrb[7].mxu1 }
 0x20c   :  { %v1558_v42 = vpop.f32.mrb[8].mxu1 }
 0x20d   :  { %v1559_v43 = vpop.f32.mrb[9].mxu1 }
 0x20e   :  { %v1560_v44 = vadd.f32 %v1559_v43, %v1558_v42  ;;  %v1561_v45 = vpop.f32.mrb[10].mxu1 }
 0x20f   :  { %v1562_v46 = vpop.f32.mrb[11].mxu1 }
 0x210   :  { %v1043_v47 = vadd.f32 %v1560_v44, %v1538_v39 }
 0x212   :  { %v1050_v13 = vpack.c.bf16 %v1043_v47, %v1043_v47 }
 0x214   :  { %v1099_v16 = vadd.bf16 %v1096_v14, %v1050_v13 }
 0x216   :  { %v1102_v17 = vmax.bf16 %v1871_v0, %v1099_v16 }
 0x22c   :  { %v961_v55 = vpop.f32.mrb[4].mxu0 }
 0x22d   :  { %v1048_v57 = vpack.c.bf16 %v961_v55, %v961_v55  ;;  %v963_v58 = vpop.f32.mrb[5].mxu0 }
 0x22e   :  { %v1049_v59 = vpack.c.bf16 %v963_v58, %v963_v58  ;;  %v965_v60 = vpop.f32.mrb[6].mxu0 }
 0x22f   :  { %v1097_v61 = vadd.bf16 %v1082_v54, %v1048_v57  ;;  %v966_v62 = vpop.f32.mrb[7].mxu0 }
 0x230   :  { %v1098_v1 = vadd.bf16 %v1089_v56, %v1049_v59 }
 0x231   :  { %v1100_v4 = vmax.bf16 %v1871_v0, %v1097_v61 }
 0x232   :  { %v1101_v2 = vmax.bf16 %v1871_v0, %v1098_v1 }
 0x234   :  { %1334 = vmatprep.mubr.bf16.mxu1 %v1101_v2 }
 0x235   :  { %1335 = vmatmul.mubr.bf16.vlgmr.msra.gmra.mrb[12].mxu1 %v1100_v4 }
 0x236   :  { %1596 = vmatpush3.bf16.msra.mxu1 %v1782_v3  ;;  %1611 = vmatprep.mubr.msk.bf16.mxu1 %vm1874_vm1, %v1873_v36 }
 0x237   :  { %1597 = vmatprep.subr.bf16.mxu1 %v1873_v36 }
 0x23a   :  { %1598 = vmatpush3.bf16.msra.mxu1 %v1783_v63 }
 0x23b   :  { %1599 = vmatprep.subr.bf16.mxu1 %v1873_v36 }
 0x23e   :  { %1600 = vmatpush3.bf16.msra.mxu1 %v1784_v5 }
 0x23f   :  { %1601 = vmatprep.subr.bf16.mxu1 %v1873_v36 }
 0x242   :  { %1602 = vmatpush3.bf16.msra.mxu1 %v1785_v7 }
 0x243   :  { %1603 = vmatprep.subr.bf16.mxu1 %v1873_v36 }
 0x246   :  { %1604 = vmatpush3.bf16.msra.mxu1 %v1786_v8 }
 0x247   :  { %1605 = vmatprep.subr.bf16.mxu1 %v1873_v36 }
 0x24a   :  { %1606 = vmatpush3.bf16.msra.mxu1 %v1787_v10 }
 0x24b   :  { %1607 = vmatprep.subr.bf16.mxu1 %v1873_v36 }
 0x24e   :  { %1608 = vmatpush3.bf16.msra.mxu1 %v1788_v12 }
 0x24f   :  { %1609 = vmatprep.subr.bf16.mxu1 %v1873_v36 }
 0x252   :  { %1610 = vmatpush3.bf16.msra.mxu1 %v1789_v15 }
 0x255   :  { %1612 = vmatmul.mubr.bf16.vlgmr.msra.gmra.mrb[16].mxu1 %v1102_v17 }
 0x308   :  { %v1580_v18 = vpop.f32.mrb[12].mxu1 }
 0x309   :  { %v1581_v19 = vpop.f32.mrb[13].mxu1 }
 0x30a   :  { %v1582_v20 = vadd.f32 %v1581_v19, %v1580_v18  ;;  %v1583_v21 = vpop.f32.mrb[14].mxu1 }
 0x30b   :  { %v1584_v22 = vpop.f32.mrb[15].mxu1 }
 0x30c   :  { %v1337_v24 = vadd.f32 %v1582_v20, %v1495_v23 }
 0x328   :  { %v1376_v6 = vpop.f32.mrb[16].mxu1 }
 0x329   :  { %v1377_v25 = vadd.f32 %v1376_v6, %v1337_v24  ;;  %v1613_v26 = vpop.f32.mrb[17].mxu1 }
 0x32a   :  { %v1379_v27 = vpop.f32.mrb[18].mxu1 }
 0x32b   :  { %1790 = vtanh.f32 %v1377_v25  ;;  %v1614_v28 = vpop.f32.mrb[19].mxu1 }
 0x335   :  { %v1791_v29 = vpop.eup %1790 }
 0x336   :  { %v1383_v30 = vmul.f32 2.0, %v1791_v29 }
 0x338   :  { %1384 = vst [vmem:[%s2001_s7] sm:$0xff] %v1383_v30 }
 0x339   :  { %1389 = vsyncpa [#allocation3], 1 }
 0x33a   :  { %1390 = vsyncpa [#allocation5], 1 }

</bundles_post_ra>
